<compile_context>
chip_gen: v5e
topology: v5e:2x2
jax: 0.10.0
libtpu: 0.0.40
codegen_flags: <defaults>
</compile_context>

<pallas_src>
import functools
import math

import jax
import jax.numpy as jnp
from jax import lax
from jax.experimental import pallas as pl
from jax.experimental.pallas import tpu as pltpu


def _round_up(x, m):
    return ((x + m - 1) // m) * m


def _attention_kernel(q_ref, k_ref, v_ref, o_ref, m_sc, l_sc, acc_sc,
                      *, scale, nk_valid, tk):
    # Batch dim is squeezed by the BlockSpecs:
    #   q_ref: (TQ, Dp)   k_ref: (TK, Dp)   v_ref: (TK, DVp)   o_ref: (TQ, DVp)
    ki = pl.program_id(2)

    @pl.when(ki == 0)
    def _init():
        m_sc[...] = jnp.full(m_sc.shape, -jnp.inf, dtype=m_sc.dtype)
        l_sc[...] = jnp.zeros(l_sc.shape, dtype=l_sc.dtype)
        acc_sc[...] = jnp.zeros(acc_sc.shape, dtype=acc_sc.dtype)

    # Fold 1/sqrt(d) into Q (cheaper than scaling the TQ x TK scores).
    q = q_ref[...] * scale
    k = k_ref[...]
    v = v_ref[...]

    # scores = Q K^T — contract the last dim of both operands; feeds the MXU
    # directly with no transpose/relayout of K.
    s = lax.dot_general(
        q, k,
        dimension_numbers=(((1,), (1,)), ((), ())),
        preferred_element_type=jnp.float32,
    )  # (TQ, TK) float32

    if nk_valid % tk != 0:
        # Mask zero-padded key columns (only the last key tile is partial).
        col = lax.broadcasted_iota(jnp.int32, s.shape, 1) + ki * tk
        s = jnp.where(col < nk_valid, s, jnp.float32(-1e30))

    # Online-softmax update.
    m_prev = m_sc[...]
    m_new = jnp.maximum(m_prev, jnp.max(s, axis=-1, keepdims=True))
    alpha = jnp.exp(m_prev - m_new)
    p = jnp.exp(s - m_new)
    l_sc[...] = alpha * l_sc[...] + jnp.sum(p, axis=-1, keepdims=True)
    acc_sc[...] = alpha * acc_sc[...] + jnp.dot(
        p.astype(v.dtype), v, preferred_element_type=jnp.float32)
    m_sc[...] = m_new

    @pl.when(ki == pl.num_programs(2) - 1)
    def _finalize():
        inv_l = pl.reciprocal(l_sc[...], approx=True)   # EUP, not VALU divide
        o_ref[...] = (acc_sc[...] * inv_l).astype(o_ref.dtype)


def self_attention(queries, keys, values, *, tq_max=128, tk_max=512):
    """Pallas TPU scaled dot-product attention (eval-mode dropout = identity).

    queries: (B, Nq, d); keys: (B, Nk, d); values: (B, Nk, dv)
    returns: (B, Nq, dv)
    """
    B, Nq, d = queries.shape
    Bk, Nk, dk = keys.shape
    Bv, Nkv, dv = values.shape
    assert d == dk and B == Bk == Bv and Nk == Nkv

    # --- Tile sizes and MXU/lane-friendly padding -----------------------------
    TQ = min(tq_max, _round_up(Nq, 8))        # sublane-aligned query tile
    TK = min(tk_max, _round_up(Nk, 128))      # lane/MXU-aligned key tile
    Nq_p = _round_up(Nq, TQ)
    Nk_p = _round_up(Nk, TK)
    Dp = _round_up(d, 128)                    # MXU contraction dim
    DVp = _round_up(dv, 128)                  # lane-dense output (unmasked vst)

    q_p = jnp.pad(queries, ((0, 0), (0, Nq_p - Nq), (0, Dp - d)))
    k_p = jnp.pad(keys,    ((0, 0), (0, Nk_p - Nk), (0, Dp - d)))
    v_p = jnp.pad(values,  ((0, 0), (0, Nk_p - Nk), (0, DVp - dv)))

    grid = (B, Nq_p // TQ, Nk_p // TK)
    scale = 1.0 / math.sqrt(d)

    kernel = functools.partial(_attention_kernel,
                               scale=scale, nk_valid=Nk, tk=TK)

    grid_spec = pltpu.PrefetchScalarGridSpec(
        num_scalar_prefetch=0,
        grid=grid,
        in_specs=[
            # Q: depends on (b, qi) only.
            pl.BlockSpec((pl.Squeezed(), TQ, Dp), lambda b, qi, ki: (b, qi, 0)),
            # K, V: depend on (b, ki) only (stay resident across q tiles).
            pl.BlockSpec((pl.Squeezed(), TK, Dp), lambda b, qi, ki: (b, ki, 0)),
            pl.BlockSpec((pl.Squeezed(), TK, DVp), lambda b, qi, ki: (b, ki, 0)),
        ],
        # Output block index is independent of ki -> resident accumulator.
        out_specs=pl.BlockSpec((pl.Squeezed(), TQ, DVp),
                               lambda b, qi, ki: (b, qi, 0)),
        scratch_shapes=[
            pltpu.VMEM((TQ, 1), jnp.float32),     # running max m
            pltpu.VMEM((TQ, 1), jnp.float32),     # running sum l
            pltpu.VMEM((TQ, DVp), jnp.float32),   # f32 output accumulator
        ],
    )

    out_p = pl.pallas_call(
        kernel,
        out_shape=jax.ShapeDtypeStruct((B, Nq_p, DVp), queries.dtype),
        grid_spec=grid_spec,
        compiler_params=pltpu.CompilerParams(
            dimension_semantics=("parallel", "parallel", "arbitrary"),
            vmem_limit_bytes=48 * 1024 * 1024,   # safe on v7x 64 MiB physical
        ),
    )(q_p, k_p, v_p)

    return out_p[:, :Nq, :dv]


def _reference(queries, keys, values):
    d = queries.shape[-1]
    scores = jnp.einsum("bqd,bkd->bqk", queries, keys) / math.sqrt(d)
    attn = jax.nn.softmax(scores, axis=2)
    return jnp.einsum("bqk,bkv->bqv", attn, values)


def _check(B, Nq, Nk, d, dv, seed):
    kq, kk, kv = jax.random.split(jax.random.PRNGKey(seed), 3)
    queries = jax.random.normal(kq, (B, Nq, d), dtype=jnp.float32)
    keys = jax.random.normal(kk, (B, Nk, d), dtype=jnp.float32)
    values = jax.random.normal(kv, (B, Nk, dv), dtype=jnp.float32)

    out = jax.block_until_ready(self_attention(queries, keys, values))
    ref = _reference(queries, keys, values)
    assert out.shape == (B, Nq, dv)
    # approx reciprocal + flash accumulation order -> slightly looser tolerance
    assert jnp.allclose(out, ref, atol=2e-3, rtol=2e-3), \
        f"mismatch vs reference for shape B={B} Nq={Nq} Nk={Nk} d={d} dv={dv}"


if __name__ == "__main__":
    # Primary small case (matches the module's bmm layout).
    _check(B=2, Nq=8, Nk=16, d=32, dv=32, seed=0)
    # Secondary case exercising multiple key tiles + key-padding mask +
    # multiple query tiles (online-softmax reduction path).
    _check(B=1, Nq=160, Nk=600, d=32, dv=32, seed=0)

    print("KERNEL_OK")
</pallas_src>

<mosaic_0001>
module attributes {stable_mosaic.version = 11 : i64} {
  func.func @_attention_kernel(%arg0: i32, %arg1: i32, %arg2: i32, %arg3: memref<1x8x128xf32, #tpu.memory_space<vmem>>, %arg4: memref<1x128x128xf32, #tpu.memory_space<vmem>>, %arg5: memref<1x128x128xf32, #tpu.memory_space<vmem>>, %arg6: memref<1x8x128xf32, #tpu.memory_space<vmem>>, %arg7: memref<8x1xf32, #tpu.memory_space<vmem>>, %arg8: memref<8x1xf32, #tpu.memory_space<vmem>>, %arg9: memref<8x128xf32, #tpu.memory_space<vmem>>) attributes {dimension_semantics = [#tpu.dimension_semantics<parallel>, #tpu.dimension_semantics<parallel>, #tpu.dimension_semantics<arbitrary>], iteration_bounds = array<i64: 2, 1, 1>, scalar_prefetch = 0 : i64, scratch_operands = 3 : i64, tpu.core_type = #tpu.core_type<tc>, window_params = [{transform_indices = @transform_0, window_bounds = array<i64: 1, 8, 128>}, {transform_indices = @transform_1, window_bounds = array<i64: 1, 128, 128>}, {transform_indices = @transform_2, window_bounds = array<i64: 1, 128, 128>}, {transform_indices = @transform_3, window_bounds = array<i64: 1, 8, 128>}]} {
    %c0_i32 = arith.constant 0 : i32
    %0 = arith.cmpi eq, %arg2, %c0_i32 : i32
    %1 = arith.extui %0 : i1 to i32
    %c0_i32_0 = arith.constant 0 : i32
    %2 = arith.cmpi ne, %1, %c0_i32_0 : i32
    scf.if %2 {
      %cst_28 = arith.constant 0xFF800000 : f32
      %45 = vector.broadcast %cst_28 : f32 to vector<8x1xf32>
      %c0_29 = arith.constant 0 : index
      %c0_30 = arith.constant 0 : index
      %46 = vector.load %arg7[%c0_29, %c0_30] : memref<8x1xf32, #tpu.memory_space<vmem>>, vector<8x1xf32>
      tpu.vector_store %arg7[%c0_29, %c0_30], %45 {strides = array<i32>} : memref<8x1xf32, #tpu.memory_space<vmem>>, vector<8x1xf32>,
      %cst_31 = arith.constant 0.000000e+00 : f32
      %47 = vector.broadcast %cst_31 : f32 to vector<8x1xf32>
      %c0_32 = arith.constant 0 : index
      %c0_33 = arith.constant 0 : index
      %48 = vector.load %arg8[%c0_32, %c0_33] : memref<8x1xf32, #tpu.memory_space<vmem>>, vector<8x1xf32>
      tpu.vector_store %arg8[%c0_32, %c0_33], %47 {strides = array<i32>} : memref<8x1xf32, #tpu.memory_space<vmem>>, vector<8x1xf32>,
      %cst_34 = arith.constant 0.000000e+00 : f32
      %49 = vector.broadcast %cst_34 : f32 to vector<8x128xf32>
      %c0_35 = arith.constant 0 : index
      %c0_36 = arith.constant 0 : index
      %50 = vector.load %arg9[%c0_35, %c0_36] : memref<8x128xf32, #tpu.memory_space<vmem>>, vector<8x128xf32>
      tpu.vector_store %arg9[%c0_35, %c0_36], %49 {strides = array<i32>} : memref<8x128xf32, #tpu.memory_space<vmem>>, vector<8x128xf32>,
    } else {
    }
    %c0 = arith.constant 0 : index
    %c0_1 = arith.constant 0 : index
    %c0_2 = arith.constant 0 : index
    %3 = vector.load %arg3[%c0, %c0_1, %c0_2] : memref<1x8x128xf32, #tpu.memory_space<vmem>>, vector<1x8x128xf32>
    %4 = vector.shape_cast %3 : vector<1x8x128xf32> to vector<8x128xf32>
    %cst = arith.constant 0.176776692 : f32
    %5 = vector.broadcast %cst : f32 to vector<8x128xf32>
    %6 = arith.mulf %4, %5 : vector<8x128xf32>
    %c0_3 = arith.constant 0 : index
    %c0_4 = arith.constant 0 : index
    %c0_5 = arith.constant 0 : index
    %7 = vector.load %arg4[%c0_3, %c0_4, %c0_5] : memref<1x128x128xf32, #tpu.memory_space<vmem>>, vector<1x128x128xf32>
    %8 = vector.shape_cast %7 : vector<1x128x128xf32> to vector<128x128xf32>
    %c0_6 = arith.constant 0 : index
    %c0_7 = arith.constant 0 : index
    %c0_8 = arith.constant 0 : index
    %9 = vector.load %arg5[%c0_6, %c0_7, %c0_8] : memref<1x128x128xf32, #tpu.memory_space<vmem>>, vector<1x128x128xf32>
    %10 = vector.shape_cast %9 : vector<1x128x128xf32> to vector<128x128xf32>
    %cst_9 = arith.constant dense<0.000000e+00> : vector<8x128xf32>
    %11 = tpu.matmul %6, %8, %cst_9 {dimension_numbers = #tpu.dot_dimension_numbers<[1], [1], [0], [0], [0, 0, 1, 0], [], []>} : vector<8x128xf32>, vector<128x128xf32>, vector<8x128xf32> -> vector<8x128xf32>
    %12 = tpu.iota {dimensions = array<i32: 1>} : vector<8x128xi32>
    %c128_i32 = arith.constant 128 : i32
    %13 = arith.muli %arg2, %c128_i32 : i32
    %14 = vector.broadcast %13 : i32 to vector<8x128xi32>
    %15 = arith.addi %12, %14 : vector<8x128xi32>
    %c16_i32 = arith.constant 16 : i32
    %16 = vector.broadcast %c16_i32 : i32 to vector<8x128xi32>
    %17 = arith.cmpi slt, %15, %16 : vector<8x128xi32>
    %cst_10 = arith.constant -1.000000e+30 : f32
    %18 = vector.broadcast %cst_10 : f32 to vector<8x128xf32>
    %19 = arith.select %17, %11, %18 : vector<8x128xi1>, vector<8x128xf32>
    %c0_11 = arith.constant 0 : index
    %c0_12 = arith.constant 0 : index
    %20 = vector.load %arg7[%c0_11, %c0_12] : memref<8x1xf32, #tpu.memory_space<vmem>>, vector<8x1xf32>
    %cst_13 = arith.constant dense<0xFF800000> : vector<8xf32>
    %21 = vector.multi_reduction <maximumf>, %19, %cst_13 [1] : vector<8x128xf32> to vector<8xf32>
    %22 = vector.shape_cast %21 : vector<8xf32> to vector<8x1xf32>
    %23 = arith.maximumf %20, %22 : vector<8x1xf32>
    %24 = arith.subf %20, %23 : vector<8x1xf32>
    %25 = math.exp %24 : vector<8x1xf32>
    %26 = vector.broadcast %23 : vector<8x1xf32> to vector<8x128xf32>
    %27 = arith.subf %19, %26 : vector<8x128xf32>
    %28 = math.exp %27 : vector<8x128xf32>
    %c0_14 = arith.constant 0 : index
    %c0_15 = arith.constant 0 : index
    %29 = vector.load %arg8[%c0_14, %c0_15] : memref<8x1xf32, #tpu.memory_space<vmem>>, vector<8x1xf32>
    %30 = arith.mulf %25, %29 : vector<8x1xf32>
    %cst_16 = arith.constant dense<0.000000e+00> : vector<8xf32>
    %31 = vector.multi_reduction <add>, %28, %cst_16 [1] : vector<8x128xf32> to vector<8xf32>
    %32 = vector.shape_cast %31 : vector<8xf32> to vector<8x1xf32>
    %33 = arith.addf %30, %32 : vector<8x1xf32>
    %c0_17 = arith.constant 0 : index
    %c0_18 = arith.constant 0 : index
    %34 = vector.load %arg8[%c0_17, %c0_18] : memref<8x1xf32, #tpu.memory_space<vmem>>, vector<8x1xf32>
    tpu.vector_store %arg8[%c0_17, %c0_18], %33 {strides = array<i32>} : memref<8x1xf32, #tpu.memory_space<vmem>>, vector<8x1xf32>,
    %c0_19 = arith.constant 0 : index
    %c0_20 = arith.constant 0 : index
    %35 = vector.load %arg9[%c0_19, %c0_20] : memref<8x128xf32, #tpu.memory_space<vmem>>, vector<8x128xf32>
    %36 = vector.broadcast %25 : vector<8x1xf32> to vector<8x128xf32>
    %37 = arith.mulf %36, %35 : vector<8x128xf32>
    %cst_21 = arith.constant dense<0.000000e+00> : vector<8x128xf32>
    %38 = tpu.matmul %28, %10, %cst_21 {dimension_numbers = #tpu.dot_dimension_numbers<[1], [0], [0], [1], [0, 0, 1, 1], [], []>} : vector<8x128xf32>, vector<128x128xf32>, vector<8x128xf32> -> vector<8x128xf32>
    %39 = arith.addf %37, %38 : vector<8x128xf32>
    %c0_22 = arith.constant 0 : index
    %c0_23 = arith.constant 0 : index
    %40 = vector.load %arg9[%c0_22, %c0_23] : memref<8x128xf32, #tpu.memory_space<vmem>>, vector<8x128xf32>
    tpu.vector_store %arg9[%c0_22, %c0_23], %39 {strides = array<i32>} : memref<8x128xf32, #tpu.memory_space<vmem>>, vector<8x128xf32>,
    %c0_24 = arith.constant 0 : index
    %c0_25 = arith.constant 0 : index
    %41 = vector.load %arg7[%c0_24, %c0_25] : memref<8x1xf32, #tpu.memory_space<vmem>>, vector<8x1xf32>
    tpu.vector_store %arg7[%c0_24, %c0_25], %23 {strides = array<i32>} : memref<8x1xf32, #tpu.memory_space<vmem>>, vector<8x1xf32>,
    %c0_i32_26 = arith.constant 0 : i32
    %42 = arith.cmpi eq, %arg2, %c0_i32_26 : i32
    %43 = arith.extui %42 : i1 to i32
    %c0_i32_27 = arith.constant 0 : i32
    %44 = arith.cmpi ne, %43, %c0_i32_27 : i32
    scf.if %44 {
      %c0_28 = arith.constant 0 : index
      %c0_29 = arith.constant 0 : index
      %45 = vector.load %arg8[%c0_28, %c0_29] : memref<8x1xf32, #tpu.memory_space<vmem>>, vector<8x1xf32>
      %46 = tpu.reciprocal %45 {approx = true} : vector<8x1xf32> -> vector<8x1xf32>
      %c0_30 = arith.constant 0 : index
      %c0_31 = arith.constant 0 : index
      %47 = vector.load %arg9[%c0_30, %c0_31] : memref<8x128xf32, #tpu.memory_space<vmem>>, vector<8x128xf32>
      %48 = vector.broadcast %46 : vector<8x1xf32> to vector<8x128xf32>
      %49 = arith.mulf %47, %48 : vector<8x128xf32>
      %c0_32 = arith.constant 0 : index
      %c0_33 = arith.constant 0 : index
      %c0_34 = arith.constant 0 : index
      %50 = vector.load %arg6[%c0_32, %c0_33, %c0_34] : memref<1x8x128xf32, #tpu.memory_space<vmem>>, vector<1x8x128xf32>
      %51 = vector.shape_cast %50 : vector<1x8x128xf32> to vector<8x128xf32>
      %52 = vector.shape_cast %49 : vector<8x128xf32> to vector<1x8x128xf32>
      tpu.vector_store %arg6[%c0_32, %c0_33, %c0_34], %52 {strides = array<i32>} : memref<1x8x128xf32, #tpu.memory_space<vmem>>, vector<1x8x128xf32>,
    } else {
    }
    return
  }
  func.func @transform_0(%arg0: i32, %arg1: i32, %arg2: i32) -> (i32, i32, i32) {
    %c0_i32 = arith.constant 0 : i32
    %c0_i32_0 = arith.constant 0 : i32
    return %arg0, %arg1, %c0_i32 : i32, i32, i32
  }
  func.func @transform_1(%arg0: i32, %arg1: i32, %arg2: i32) -> (i32, i32, i32) {
    %c0_i32 = arith.constant 0 : i32
    %c0_i32_0 = arith.constant 0 : i32
    return %arg0, %arg2, %c0_i32 : i32, i32, i32
  }
  func.func @transform_2(%arg0: i32, %arg1: i32, %arg2: i32) -> (i32, i32, i32) {
    %c0_i32 = arith.constant 0 : i32
    %c0_i32_0 = arith.constant 0 : i32
    return %arg0, %arg2, %c0_i32 : i32, i32, i32
  }
  func.func @transform_3(%arg0: i32, %arg1: i32, %arg2: i32) -> (i32, i32, i32) {
    %c0_i32 = arith.constant 0 : i32
    %c0_i32_0 = arith.constant 0 : i32
    return %arg0, %arg1, %c0_i32 : i32, i32, i32
  }
}

</mosaic_0001>

<bundles_post_ra>
// kernel: tpu_custom_call.1
= control target key start
LH: loop header
LB: loop body
LE: loop exit
PB: predicated region body
PF: predicated region fallthrough
CT: control target
= control target key end

     0   :  { %s1102_s0 = inlined_call_operand.hbm [shape: f32[2,8,128], index: 0, kind: input, shape index: {}]   ;;  %s1103_s1 = inlined_call_operand.hbm [shape: f32[2,128,128], index: 1, kind: input, shape index: {}]   ;;  %s1104_s2 = inlined_call_operand.hbm [shape: f32[2,128,128], index: 2, kind: input, shape index: {}]   ;;  %s1105_s3 = inlined_call_operand.hbm [shape: f32[2,8,128], index: 3, kind: output, shape index: {}]  }
   0x1   :  { %1108 = sst [smem:[#allocation18_spill]] %s1103_s1 }
   0x2   :  { %8 = vsyncpa [#allocation6], 0 }
   0x3   :  { %10 = vsyncpa [#allocation6 + $0x1], 0 }
   0x4   :  { %11 = vsyncpa [#allocation9], 0 }
   0x5   :  { %13 = vsyncpa [#allocation9 + $0x1], 0 }
   0x6   :  { %14 = vsyncpa [#allocation7], 0 }
   0x7   :  { %16 = vsyncpa [#allocation7 + $0x1], 0  ;;  %s898_s12 = smov 0   ;;  %s900_s13 = smov 0  }
   0x8   :  { %s902_s14 = smov 0   ;;  %s904_s15 = smov 0  }
   0x9   :  { %s906_s16 = smov 0   ;;  %s908_s17 = smov 0  }
   0xa LB: > { %1109 = sst [smem:[#allocation15_spill]] %s859_s14  ;;  %s929_s18 = sadd.s32 4294967295, %s871_s17   ;;  %s871_s17 = sphi %s908_s17, %s22_s17   ;;  %s867_s16 = sphi %s906_s16, %s1124_s16   ;;  %s863_s15 = sphi %s904_s15, %s1123_s15   ;;  %s859_s14 = sphi %s902_s14, %s1119_s14   ;;  %s855_s13 = sphi %s900_s13, %s1122_s13   ;;  %s851_s12 = sphi %s898_s12, %s1121_s12  }
   0xb   : > { %s587_s19 = sadd.s32 4294967294, %s871_s17   ;;  %s41_s20 = sadd.s32 1, %s867_s16 }
   0xc   : > { %s50_s21 = sadd.s32 1, %s859_s14  ;;  %p43_p0 = scmp.ge.s32.totalorder %s41_s20, 2 }
   0xd   : > { %p57_p1 = scmp.ne.s32.totalorder %s859_s14, %s855_s13  ;;  %p58_p2 = scmp.eq.s32.totalorder %s871_s17, 0 }
   0xe   : > { %p63_p3 = scmp.ne.s32.totalorder %s855_s13, %s851_s12  ;;  %s1126_s20 = smov (%p43_p0, %s41_s20), 0 }
   0xf   : > { %1110 = sst [smem:[#allocation16_spill]] %s1126_s20  ;;  %p941_p4 = por %p58_p2, %p57_p1 }
  0x10   : > { %p64_p5 = scmp.eq.s32.totalorder %s929_s18, 0  ;;  %s45_s23 = ssub.s32 %s867_s16, %s1126_s20 }
  0x11   : > { %p145_p6 = scmp.eq.s32.totalorder %s929_s18, 1  ;;  %p48_p7 = scmp.eq.s32.totalorder %s45_s23, 0 }
  0x12   : > { %p949_p8 = por %p64_p5, %p63_p3  ;;  %p151_p10 = scmp.eq.s32.totalorder %s587_s19, 1 }
  0x13   : > { %p953_p9 = por %p145_p6, %p57_p1  ;;  %p589_p12 = scmp.ge.s32.totalorder %s871_s17, 2 }
  0x14   : > { %s958_s26 = scalar_select %p48_p7, %s859_s14, %s50_s21  }
  0x15   : > { %p960_p11 = por %p151_p10, %p63_p3  ;;  %p631_p13 = scmp.lt.s32.totalorder %s871_s17, 2 }
  0x16   : > { %1114 = sst [smem:[#allocation17_spill]] %s958_s26  ;;  %s967_s28 = sand.u32 1, %s859_s14  }
  0x17   : > { %s191_s29 = sand.u32 1, %s871_s17   ;;  %s592_s30 = sshll.u32 %s967_s28, 7 }
  0x18   : > { %p973_p0 = pnand %p631_p13, %p941_p4  ;;  %s607_s5 = sshll.u32 %s867_s16, 7 }
  0x19   : > { %s1117_s1 = sld [smem:[#allocation18_spill]]  ;;  %s195_s10 = scalar_lea.vmem [#allocation8], %s592_s30 }
  0x1a   : > { %s205_s11 = sshll.u32 %s195_s10, 4  ;;  %s192_s19 = scalar_lea.sflag [#allocation9], %s191_s29  ;;  %s206_s11 = int_to_ptr.vmem [resolvable:$true] %s205_s11 }
  0x1b   : > { %s873_s21 = smov 128   ;;  %s874_s22 = smov 8  }
  0x1c   : > { %s226_s26 = scalar_lea.hbm %s1104_s2, %s607_s5  ;;  %s219_s7 = scalar_lea.vmem [#allocation10], %s592_s30 }
  0x1d   : > { %s227_s6 = sshll.u32 %s226_s26, 4  ;;  %p598_p1 = scmp.ge.s32.totalorder %s871_s17, 1  ;;  %s228_s6 = int_to_ptr.hbm [resolvable:$true] %s227_s6 }
  0x1e   : > { %p237_p2 = scmp.lt.s32.totalorder %s871_s17, 3  ;;  %s590_s29 = sshll.u32 %s967_s28, 3 }
  0x1f   : > { %s202_s8 = scalar_lea.hbm %s1117_s1, %s607_s5  ;;  %s591_s10 = sshll.u32 %s867_s16, 3 }
  0x20   : > { %s203_s9 = sshll.u32 %s202_s8, 4  ;;  %s229_s8 = sshll.u32 %s219_s7, 4  ;;  %s204_s9 = int_to_ptr.hbm [resolvable:$true] %s203_s9  ;;  %s230_s8 = int_to_ptr.vmem [resolvable:$true] %s229_s8 }
  0x21   : > { %623 = dma.hbm_to_vmem [thread:$0]  (!%p973_p0), %s204_s9, 2048, %s206_s11, %s192_s19, %s873_s21, %s873_s21, %s874_s22  }
  0x22   : > { %p238_p3 = pnand %p598_p1, %p237_p2  ;;  %s180_s9 = scalar_lea.hbm %s1102_s0, %s591_s10 }
  0x23   : > { %s182_s11 = sshll.u32 %s180_s9, 4  ;;  %s175_s20 = scalar_lea.vmem [#allocation5], %s590_s29  ;;  %s183_s11 = int_to_ptr.hbm [resolvable:$true] %s182_s11 }
  0x24   : > { %s184_s5 = sshll.u32 %s175_s20, 4  ;;  %s172_s26 = scalar_lea.sflag [#allocation6], %s967_s28  ;;  %s185_s5 = int_to_ptr.vmem [resolvable:$true] %s184_s5 }
  0x25   : > { %620 = dma.hbm_to_vmem [thread:$0]  (!%p973_p0), %s183_s11, 128, %s185_s5, %s172_s26  }
  0x26   : > { %626 = dma.hbm_to_vmem [thread:$0]  (!%p973_p0), %s228_s6, 2048, %s230_s8, %s192_s19, %s873_s21, %s873_s21, %s874_s22  }
  0x27   : > { %241 = sbr.rel (%p238_p3) target bundleno = 712 (0x2c8), region = 32  ;;  %s999_s30 = sand.u32 (!%p238_p3), 1, %s855_s13  }
  0x28   : > { %s599_s1 = sshll.u32 (!%p238_p3), %s999_s30, 3  ;;  %s244_s14 = scalar_lea.sflag (!%p238_p3), [#allocation6], %s999_s30 }
  0x29   : > { %s1005_s23 = scalar_lea.vmem (!%p238_p3), [#allocation5], %s599_s1 }
  0x2c   : > { %838 = dma.done.wait (%p949_p8), %s244_s14, 128  }
  0x2d   : > { %840 = vsyncadd (%p949_p8), %s244_s14, 4294967168  ;;  %s253_s28 = sand.u32 1, %s929_s18   ;;  %s600_s4 = sshll.u32 %s999_s30, 7 }
  0x2e   : > { %s254_s19 = scalar_lea.sflag [#allocation9], %s253_s28  ;;  %s1015_s21 = scalar_lea.vmem [#allocation8], %s600_s4 }
  0x2f   : > { %842 = dma.done.wait (%p949_p8), %s254_s19, 4096  }
  0x30   : > { %844 = vsyncadd (%p949_p8), %s254_s19, 4294963200  ;;  %v328_v0 = vld [vmem:[%s1015_s21 + $0x78] sm:$0xff]  ;;  %v327_v1 = vld [vmem:[%s1015_s21 + $0x70] sm:$0xff]  ;;  %vm307_vm0 = vcmask 7168   ;;  %v875_v18 = vmov -inf   ;;  %v365_v19 = vlaneseq  ;;  %v876_v23 = vmov 0  }
  0x31   : > { %345 = vmatpush.xpose.msra.mxu0 %v328_v0  ;;  %v326_v2 = vld [vmem:[%s1015_s21 + $0x68] sm:$0xff]  ;;  %v325_v3 = vld [vmem:[%s1015_s21 + $0x60] sm:$0xff]  ;;  %v324_v4 = vld [vmem:[%s1015_s21 + $0x58] sm:$0xff]  ;;  %308 = vst.msk [vmem:[#allocation2] sm:$0xff] %vm307_vm0, %v875_v18  ;;  %686 = vset.pattern.permute.xlu0 %v876_v23  ;;  %v877_v24 = vmov 0.0   ;;  %s1042_s18 = scalar_lea.vmem [#allocation10], %s600_s4 }
  0x32   : > { %v323_v5 = vld [vmem:[%s1015_s21 + $0x50] sm:$0xff]  ;;  %v322_v6 = vld [vmem:[%s1015_s21 + $0x48] sm:$0xff]  ;;  %v321_v7 = vld [vmem:[%s1015_s21 + $0x40] sm:$0xff]  ;;  %v366_v20 = vand.u32 127, %v365_v19  ;;  %687 = vset.pattern.permute.xlu1 %v876_v23  ;;  %688 = vset.pattern.permute.xlu2 %v876_v23  ;;  %309 = vst.msk [vmem:[#allocation3] sm:$0xff] %vm307_vm0, %v877_v24  ;;  %s604_s24 = sshll.u32 %s863_s15, 3 }
  0x33   : > { %v320_v8 = vld [vmem:[%s1015_s21 + $0x38] sm:$0xff]  ;;  %v319_v9 = vld [vmem:[%s1015_s21 + $0x30] sm:$0xff]  ;;  %v318_v10 = vld [vmem:[%s1015_s21 + $0x28] sm:$0xff]  ;;  %s449_s7 = scalar_lea.hbm %s1105_s3, %s604_s24  ;;  %s300_s8 = scalar_lea.vmem [#allocation11], %s599_s1 }
  0x34   : > { %v317_v11 = vld [vmem:[%s1015_s21 + $0x20] sm:$0xff]  ;;  %v316_v12 = vld [vmem:[%s1015_s21 + $0x18] sm:$0xff]  ;;  %v315_v13 = vld [vmem:[%s1015_s21 + $0x10] sm:$0xff]  ;;  %vm370_vm1 = vcmp.lt.s32.totalorder %v366_v20, 16  ;;  %s451_s29 = sshll.u32 %s300_s8, 4  ;;  %s453_s10 = sshll.u32 %s449_s7, 4  ;;  %s452_s29 = int_to_ptr.vmem [resolvable:$true] %s451_s29  ;;  %s454_s10 = int_to_ptr.hbm [resolvable:$true] %s453_s10 }
  0x35   : > { %346 = vmatpush.xpose.msra.mxu0 %v327_v1  ;;  %v314_v14 = vld [vmem:[%s1015_s21 + $0x8] sm:$0xff]  ;;  %v311_v15 = vld [vmem:[%s1005_s23] sm:$0xff]  ;;  %v313_v16 = vld [vmem:[%s1015_s21] sm:$0xff]  ;;  %s438_s9 = scalar_lea.sflag [#allocation7], %s999_s30  ;;  %s799_s11 = sshra.s32 %s454_s10, 4  ;;  %s800_s11 = int_to_ptr.hbm [resolvable:$true] %s799_s11 }
  0x36   : > { %v312_v17 = vmul.f32 0.17677669, %v311_v15  ;;  %v344_v25 = vld [vmem:[%s1042_s18 + $0x78] sm:$0xff]  ;;  %v343_v26 = vld [vmem:[%s1042_s18 + $0x70] sm:$0xff]  ;;  %v342_v27 = vld [vmem:[%s1042_s18 + $0x68] sm:$0xff]  ;;  %s801_s15 = scalar_lea.hbm %s800_s11, 8  ;;  %p806_p7 = scmp.lt.s32.totalorder %s800_s11, %s1105_s3 }
  0x37   : > { %401 = vmatpush.msra.mxu1 %v344_v25  ;;  %v341_v28 = vld [vmem:[%s1042_s18 + $0x60] sm:$0xff]  ;;  %v340_v29 = vld [vmem:[%s1042_s18 + $0x58] sm:$0xff]  ;;  %v339_v30 = vld [vmem:[%s1042_s18 + $0x50] sm:$0xff]  ;;  %p802_p4 = scmp.ne.s32.totalorder %s800_s11, %s801_s15  ;;  %s805_s26 = scalar_lea.hbm %s1105_s3, 16 }
  0x38   : > { %v338_v31 = vld [vmem:[%s1042_s18 + $0x48] sm:$0xff]  ;;  %v337_v32 = vld [vmem:[%s1042_s18 + $0x40] sm:$0xff]  ;;  %v336_v33 = vld [vmem:[%s1042_s18 + $0x38] sm:$0xff]  ;;  %p807_p8 = scmp.lt.s32.totalorder %s805_s26, %s801_s15 }
  0x39   : > { %347 = vmatpush.xpose.msra.mxu0 %v326_v2  ;;  %402 = vmatpush.msra.mxu1 %v343_v26  ;;  %v335_v34 = vld [vmem:[%s1042_s18 + $0x30] sm:$0xff]  ;;  %v372_v35 = vld [vmem:[#allocation2] sm:$0xff]  ;;  %v334_v39 = vld [vmem:[%s1042_s18 + $0x28] sm:$0xff]  ;;  %p803_p5 = pnand %p802_p4, %p953_p9 }
  0x3a   : > { %v333_v40 = vld [vmem:[%s1042_s18 + $0x20] sm:$0xff]  ;;  %v332_v41 = vld [vmem:[%s1042_s18 + $0x18] sm:$0xff]  ;;  %v331_v42 = vld [vmem:[%s1042_s18 + $0x10] sm:$0xff]  ;;  %p808_p10 = por %p807_p8, %p806_p7 }
  0x3b   : > { %403 = vmatpush.msra.mxu1 %v342_v27  ;;  %v330_v43 = vld [vmem:[%s1042_s18 + $0x8] sm:$0xff]  ;;  %v329_v44 = vld [vmem:[%s1042_s18] sm:$0xff]  ;;  %p804_p6 = pneg %p803_p5 }
  0x3c   : > { %v387_v51 = vld [vmem:[#allocation3] sm:$0xff] }
  0x3d   : > { %348 = vmatpush.xpose.msra.mxu0 %v325_v3  ;;  %404 = vmatpush.msra.mxu1 %v341_v28  ;;  %p809_p13 = pnand %p808_p10, %p804_p6 }
  0x3f   : > { %405 = vmatpush.msra.mxu1 %v340_v29 }
  0x41   : > { %349 = vmatpush.xpose.msra.mxu0 %v324_v4  ;;  %406 = vmatpush.msra.mxu1 %v339_v30 }
  0x43   : > { %407 = vmatpush.msra.mxu1 %v338_v31 }
  0x45   : > { %350 = vmatpush.xpose.msra.mxu0 %v323_v5  ;;  %408 = vmatpush.msra.mxu1 %v337_v32 }
  0x47   : > { %409 = vmatpush.msra.mxu1 %v336_v33 }
  0x49   : > { %351 = vmatpush.xpose.msra.mxu0 %v322_v6  ;;  %410 = vmatpush.msra.mxu1 %v335_v34 }
  0x4b   : > { %411 = vmatpush.msra.mxu1 %v334_v39 }
  0x4d   : > { %352 = vmatpush.xpose.msra.mxu0 %v321_v7  ;;  %412 = vmatpush.msra.mxu1 %v333_v40 }
  0x4f   : > { %413 = vmatpush.msra.mxu1 %v332_v41 }
  0x51   : > { %353 = vmatpush.xpose.msra.mxu0 %v320_v8  ;;  %414 = vmatpush.msra.mxu1 %v331_v42 }
  0x53   : > { %415 = vmatpush.msra.mxu1 %v330_v43 }
  0x55   : > { %354 = vmatpush.xpose.msra.mxu0 %v319_v9  ;;  %416 = vmatpush.msra.mxu1 %v329_v44 }
  0x59   : > { %355 = vmatpush.xpose.msra.mxu0 %v318_v10 }
  0x5d   : > { %356 = vmatpush.xpose.msra.mxu0 %v317_v11 }
  0x61   : > { %357 = vmatpush.xpose.msra.mxu0 %v316_v12 }
  0x65   : > { %358 = vmatpush.xpose.msra.mxu0 %v315_v13 }
  0x69   : > { %359 = vmatpush.xpose.msra.mxu0 %v314_v14 }
  0x6d   : > { %360 = vmatpush.xpose.msra.mxu0 %v313_v16 }
  0x70   : > { %361 = vmatmul.f32.vlgmr.msra.gmra.mxu0 %v312_v17 }
  0xed   : > { %v362_v21 = vpop.f32.mrf.mxu0 }
  0xee   : > { %v371_v22 = vsel %vm370_vm1, %v362_v21, -1e+30 }
  0xef   : > { %373 = vmax.xlane.f32.xlu0 %v371_v22 }
 0x162   : > { %v374_v36 = vpop.xlane.xlu0 %373 }
 0x163   : > { %v375_v37 = vmax.f32 %v372_v35, %v374_v36 }
 0x165   : > { %v376_v38 = vsub.f32 %v372_v35, %v375_v37  ;;  %423 = vst.msk [vmem:[#allocation2] sm:$0xff] %vm307_vm0, %v375_v37  ;;  %381 = vperm.xlu0 %686, %v375_v37  }
 0x167   : > { %v377_v49 = vmul.f32 1.442695, %v376_v38 }
 0x1d7   : > { %v382_v45 = vpop.permute.xlu0 %381 }
 0x1d8   : > { %v384_v46 = vsub.f32 %v371_v22, %v382_v45 }
 0x1da   : > { %v385_v47 = vmul.f32 1.442695, %v384_v46 }
 0x1dc   : > { %689 = vpow2.f32 %v385_v47 }
 0x1dd   : > { %691 = vpow2.f32 %v377_v49 }
 0x1e2   : > { %v690_v48 = vpop.eup %689 }
 0x1e3   : > { %389 = vadd.xlane.f32.xlu1 %v690_v48  ;;  %417 = vmatmul.f32.vlgmr.msra.gmra.mxu1 %v690_v48  ;;  %v692_v50 = vpop.eup %691 }
 0x1e4   : > { %v388_v52 = vmul.f32 %v692_v50, %v387_v51 }
 0x1fc   : > { %397 = vperm.xlu1 %687, %v692_v50  }
 0x256   : > { %v390_v53 = vpop.xlane.xlu1 %389 }
 0x257   : > { %v391_v54 = vadd.f32 %v390_v53, %v388_v52 }
 0x259   : > { %393 = vst.msk [vmem:[#allocation3] sm:$0xff] %vm307_vm0, %v391_v54 }
 0x260   : > { %v427_v55 = vld [vmem:[#allocation3] sm:$0xff]  ;;  %v418_v59 = vpop.f32.mrf.mxu1 }
 0x261   : > { %693 = vrcp.f32 %v427_v55 }
 0x267   : > { %v694_v56 = vpop.eup %693 }
 0x268   : > { %432 = vperm.xlu2 %688, %v694_v56  }
 0x26e   : > { %v398_v57 = vpop.permute.xlu1 %397 }
 0x26f   : > { %v400_v58 = vmul.f32 0.0, %v398_v57 }
 0x271   : > { %v421_v60 = vadd.f32 %v418_v59, %v400_v58 }
 0x2c2   : > { %v433_v61 = vpop.permute.xlu2 %432 }
 0x2c3   : > { %v435_v62 = vmul.f32 %v433_v61, %v421_v60 }
 0x2c5   : > { %436 = vst [vmem:[%s300_s8] sm:$0xff] %v435_v62 }
 0x2c6   : > { %812 = shalt.err (!%p809_p13)
}
 0x2c7   : > { %615 = dma.vmem_to_hbm [thread:$0]  (%p953_p9), %s452_s29, 128, %s454_s10, %s438_s9  }
 0x2c8 PF: > { %s465_s30 = sand.u32 1, %s851_s12   ;;  %p628_p0 = pnand %p589_p12, %p960_p11 }
 0x2c9   : > { %s466_s23 = scalar_lea.sflag [#allocation7], %s465_s30 }
 0x2ca   : > { %p629_p1 = pneg %p628_p0 }
 0x2cc   : > { %846 = dma.done.wait (%p629_p1), %s466_s23, 128  }
 0x2cd   : > { %848 = vsyncadd (%p629_p1), %s466_s23, 4294967168  ;;  %s22_s17 = sadd.s32 1, %s871_s17   ;;  %s1118_s28 = sld [smem:[#allocation15_spill]] }
 0x2ce   : > { %p19_p2 = scmp.ge.s32.totalorder %s22_s17, 4   ;;  %s1119_s14 = sld [smem:[#allocation17_spill]] }
 0x2cf   : > { %s1120_s25 = sld [smem:[#allocation16_spill]]  ;;  %s1121_s12 = smov %s855_s13 }
 0x2d0   : > { %s1123_s15 = smov %s867_s16 }
 0x2d1   :  { %21 = sbr.rel (!%p19_p2) target bundleno = 10 (0xa), region = 109 }
 0x2d3   : > { %s1122_s13 = smov %s1118_s28 }
 0x2d5   : > { %s1124_s16 = smov %s1120_s25 }
 0x2d6   :  { %472 = vsyncpa [#allocation6], 1 }
 0x2d7   :  { %474 = vsyncpa [#allocation6 + $0x1], 1 }
 0x2d8   :  { %475 = vsyncpa [#allocation9], 1 }
 0x2d9   :  { %477 = vsyncpa [#allocation9 + $0x1], 1 }
 0x2da   :  { %478 = vsyncpa [#allocation7], 1 }
 0x2db   :  { %480 = vsyncpa [#allocation7 + $0x1], 1 }

</bundles_post_ra>
